<compile_context>
chip_gen: v5e
topology: v5e:2x2
jax: 0.10.0
libtpu: 0.0.40
codegen_flags: <defaults>
</compile_context>

<pallas_src>
import functools
import numpy as np

import jax
import jax.numpy as jnp
from jax.experimental import pallas as pl
from jax.experimental.pallas import tpu as pltpu

_LANE = 128
_MAX_BLOCK_ROWS = 256       # 8 * 256 * 128 * 4 B = 1 MiB per grid step


def _round_up(n, m):
    return (n + m - 1) // m * m


def _oifft4_kernel(x_ref, o_ref, *, t, k, c270, s270, c90, s90):
    """One (8, block_r, 128) tile: rows are [x0r,x0i,x1r,x1i,x2r,x2i,x3r,x3i]."""
    x0r, x0i = x_ref[0], x_ref[1]
    x1r, x1i = x_ref[2], x_ref[3]
    x2r, x2i = x_ref[4], x_ref[5]
    x3r, x3i = x_ref[6], x_ref[7]

    def cmul(ar, ai, br, bi):
        # complex_mult((ar,ai), (br,bi))
        return ar * br - ai * bi, ar * bi + ai * br

    def coupler(ar, ai, br, bi):
        # y1 = t*a + i*k*b ; y2 = i*k*a + t*b
        y1r = t * ar - k * bi
        y1i = t * ai + k * br
        y2r = t * br - k * ai
        y2i = t * bi + k * ar
        return y1r, y1i, y2r, y2i

    def coupler_ps(ar, ai, br, bi):
        # DirectionalCoupler2X2_withPhaseShift
        br, bi = cmul(br, bi, c270, s270)
        y1r, y1i, y2r, y2i = coupler(ar, ai, br, bi)
        y2r, y2i = cmul(y2r, y2i, c270, s270)
        return y1r, y1i, y2r, y2i

    a0r, a0i, a2r, a2i = coupler_ps(x0r, x0i, x2r, x2i)
    a1r, a1i, a3r, a3i = coupler_ps(x1r, x1i, x3r, x3i)
    X0r, X0i, X2r, X2i = coupler_ps(a0r, a0i, a1r, a1i)
    b3r, b3i = cmul(a3r, a3i, c90, s90)          # phaseshifter90
    X1r, X1i, X3r, X3i = coupler_ps(a2r, a2i, b3r, b3i)

    o_ref[0] = X0r
    o_ref[1] = X0i
    o_ref[2] = X1r
    o_ref[3] = X1i
    o_ref[4] = X2r
    o_ref[5] = X2i
    o_ref[6] = X3r
    o_ref[7] = X3i


def oifft4(x, *, max_block_rows=_MAX_BLOCK_ROWS):
    """JAX/Pallas equivalent of OIFFT4().forward(x).

    x: f32[..., 4, 2]  ->  f32[4, ..., 2]
    (The reference module only supports x of shape (4, 2); this wrapper
     additionally broadcasts the same per-element butterfly over any leading
     batch dims.)
    """
    assert x.shape[-2:] == (4, 2), "expected x[..., 4, 2] (4 complex inputs)"
    assert max_block_rows % 8 == 0
    batch_shape = x.shape[:-2]
    B = int(np.prod(batch_shape)) if batch_shape else 1

    # Constants, exactly as the torch module builds them (folded at trace time).
    t = float(np.sqrt(0.5))
    k = float(np.sqrt(1.0 - np.sqrt(0.5) ** 2))
    c270, s270 = float(np.cos(1.5 * np.pi)), float(np.sin(1.5 * np.pi))
    c90, s90 = float(np.cos(0.5 * np.pi)), float(np.sin(0.5 * np.pi))

    # Component-major, lane-dense layout: (..., 4, 2) -> (B, 8) -> (8, B) -> (8, R, 128)
    Bp = max(_round_up(B, _LANE), _LANE)
    xt = jnp.transpose(x.reshape(B, 8))                 # (8, B)
    if Bp != B:
        # Only for batch sizes not already a multiple of 128; fuses with the transpose.
        xt = jnp.pad(xt, ((0, 0), (0, Bp - B)))
    R = Bp // _LANE
    xt = xt.reshape(8, R, _LANE)

    block_r = R if R <= max_block_rows else max_block_rows   # full R or multiple of 8
    grid = (pl.cdiv(R, block_r),)

    nbytes = 8 * Bp * x.dtype.itemsize
    kernel = functools.partial(
        _oifft4_kernel, t=t, k=k, c270=c270, s270=s270, c90=c90, s90=s90)

    out = pl.pallas_call(
        kernel,
        out_shape=jax.ShapeDtypeStruct((8, R, _LANE), x.dtype),
        grid=grid,
        in_specs=[pl.BlockSpec((8, block_r, _LANE), lambda i: (0, i, 0))],
        out_specs=pl.BlockSpec((8, block_r, _LANE), lambda i: (0, i, 0)),
        input_output_aliases={0: 0},                     # write in place
        compiler_params=pltpu.CompilerParams(
            dimension_semantics=("parallel",)),          # megacore-friendly
        cost_estimate=pl.CostEstimate(
            flops=104 * Bp, transcendentals=0, bytes_accessed=2 * nbytes),
    )(xt)

    # (8, R, 128) -> (8, B) -> (4, 2, B) -> (4, B, 2) -> (4, *batch, 2)
    out = out.reshape(8, Bp)[:, :B]
    out = out.reshape(4, 2, B).transpose(0, 2, 1)
    return out.reshape((4,) + batch_shape + (2,))


def _reference(x):
    """Pure-jnp reference mirroring the PyTorch module (complex arithmetic)."""
    t = float(np.sqrt(0.5))
    k = float(np.sqrt(1.0 - np.sqrt(0.5) ** 2))
    e270 = complex(np.cos(1.5 * np.pi), np.sin(1.5 * np.pi))
    e90 = complex(np.cos(0.5 * np.pi), np.sin(0.5 * np.pi))

    xc = x[..., 0] + 1j * x[..., 1]
    x0, x1, x2, x3 = xc[..., 0], xc[..., 1], xc[..., 2], xc[..., 3]

    def coupler(a, b):
        return t * a + 1j * k * b, 1j * k * a + t * b

    def coupler_ps(a, b):
        b = b * e270
        y1, y2 = coupler(a, b)
        return y1, y2 * e270

    a0, a2 = coupler_ps(x0, x2)
    a1, a3 = coupler_ps(x1, x3)
    X0, X2 = coupler_ps(a0, a1)
    X1, X3 = coupler_ps(a2, a3 * e90)
    X = jnp.stack([X0, X1, X2, X3], axis=0)
    return jnp.stack([X.real, X.imag], axis=-1).astype(x.dtype)


if __name__ == "__main__":
    key = jax.random.PRNGKey(0)
    k0, k1, k2, k3 = jax.random.split(key, 4)
    fwd = jax.jit(oifft4, static_argnames=("max_block_rows",))

    # Primary shape: batch=2, seq=64 -> 128 lane columns (aligned, no padding).
    x = jax.random.normal(k0, (2, 64, 4, 2), dtype=jnp.float32)
    out = fwd(x)
    jax.block_until_ready(out)
    assert out.shape == (4, 2, 64, 2) and out.dtype == x.dtype
    assert jnp.allclose(out, _reference(x), atol=1e-5, rtol=1e-5)

    # Strict module shape: a single set of 4 complex inputs.
    xs = jax.random.normal(k1, (4, 2), dtype=jnp.float32)
    outs = fwd(xs)
    jax.block_until_ready(outs)
    assert outs.shape == (4, 2)
    assert jnp.allclose(outs, _reference(xs), atol=1e-5, rtol=1e-5)

    # Multi-step parallel grid: B=2048 -> R=16, block_r=8 -> grid=(2,).
    xm = jax.random.normal(k2, (2, 1024, 4, 2), dtype=jnp.float32)
    outm = fwd(xm, max_block_rows=8)
    jax.block_until_ready(outm)
    assert outm.shape == (4, 2, 1024, 2)
    assert jnp.allclose(outm, _reference(xm), atol=1e-5, rtol=1e-5)

    # Batch not a multiple of 128 (exercises the lane pad / unpad fallback).
    xr = jax.random.normal(k3, (3, 100, 4, 2), dtype=jnp.float32)
    outr = fwd(xr)
    jax.block_until_ready(outr)
    assert outr.shape == (4, 3, 100, 2)
    assert jnp.allclose(outr, _reference(xr), atol=1e-5, rtol=1e-5)

    print("KERNEL_OK")
</pallas_src>

<mosaic_0001>
module attributes {stable_mosaic.version = 11 : i64} {
  func.func @_oifft4_kernel(%arg0: i32, %arg1: memref<8x1x128xf32, #tpu.memory_space<vmem>>, %arg2: memref<8x1x128xf32, #tpu.memory_space<vmem>>) attributes {dimension_semantics = [#tpu.dimension_semantics<parallel>], iteration_bounds = array<i64: 1>, scalar_prefetch = 0 : i64, scratch_operands = 0 : i64, tpu.core_type = #tpu.core_type<tc>, window_params = [{transform_indices = @transform_0, window_bounds = array<i64: 8, 1, 128>}, {transform_indices = @transform_1, window_bounds = array<i64: 8, 1, 128>}]} {
    %c0 = arith.constant 0 : index
    %c0_0 = arith.constant 0 : index
    %c0_1 = arith.constant 0 : index
    %0 = vector.load %arg1[%c0, %c0_0, %c0_1] : memref<8x1x128xf32, #tpu.memory_space<vmem>>, vector<1x1x128xf32>
    %1 = vector.shape_cast %0 : vector<1x1x128xf32> to vector<1x128xf32>
    %c1 = arith.constant 1 : index
    %c0_2 = arith.constant 0 : index
    %c0_3 = arith.constant 0 : index
    %2 = vector.load %arg1[%c1, %c0_2, %c0_3] : memref<8x1x128xf32, #tpu.memory_space<vmem>>, vector<1x1x128xf32>
    %3 = vector.shape_cast %2 : vector<1x1x128xf32> to vector<1x128xf32>
    %c2 = arith.constant 2 : index
    %c0_4 = arith.constant 0 : index
    %c0_5 = arith.constant 0 : index
    %4 = vector.load %arg1[%c2, %c0_4, %c0_5] : memref<8x1x128xf32, #tpu.memory_space<vmem>>, vector<1x1x128xf32>
    %5 = vector.shape_cast %4 : vector<1x1x128xf32> to vector<1x128xf32>
    %c3 = arith.constant 3 : index
    %c0_6 = arith.constant 0 : index
    %c0_7 = arith.constant 0 : index
    %6 = vector.load %arg1[%c3, %c0_6, %c0_7] : memref<8x1x128xf32, #tpu.memory_space<vmem>>, vector<1x1x128xf32>
    %7 = vector.shape_cast %6 : vector<1x1x128xf32> to vector<1x128xf32>
    %c4 = arith.constant 4 : index
    %c0_8 = arith.constant 0 : index
    %c0_9 = arith.constant 0 : index
    %8 = vector.load %arg1[%c4, %c0_8, %c0_9] : memref<8x1x128xf32, #tpu.memory_space<vmem>>, vector<1x1x128xf32>
    %9 = vector.shape_cast %8 : vector<1x1x128xf32> to vector<1x128xf32>
    %c5 = arith.constant 5 : index
    %c0_10 = arith.constant 0 : index
    %c0_11 = arith.constant 0 : index
    %10 = vector.load %arg1[%c5, %c0_10, %c0_11] : memref<8x1x128xf32, #tpu.memory_space<vmem>>, vector<1x1x128xf32>
    %11 = vector.shape_cast %10 : vector<1x1x128xf32> to vector<1x128xf32>
    %c6 = arith.constant 6 : index
    %c0_12 = arith.constant 0 : index
    %c0_13 = arith.constant 0 : index
    %12 = vector.load %arg1[%c6, %c0_12, %c0_13] : memref<8x1x128xf32, #tpu.memory_space<vmem>>, vector<1x1x128xf32>
    %13 = vector.shape_cast %12 : vector<1x1x128xf32> to vector<1x128xf32>
    %c7 = arith.constant 7 : index
    %c0_14 = arith.constant 0 : index
    %c0_15 = arith.constant 0 : index
    %14 = vector.load %arg1[%c7, %c0_14, %c0_15] : memref<8x1x128xf32, #tpu.memory_space<vmem>>, vector<1x1x128xf32>
    %15 = vector.shape_cast %14 : vector<1x1x128xf32> to vector<1x128xf32>
    %cst = arith.constant -1.83697015E-16 : f32
    %16 = vector.broadcast %cst : f32 to vector<1x128xf32>
    %17 = arith.mulf %9, %16 : vector<1x128xf32>
    %cst_16 = arith.constant -1.000000e+00 : f32
    %18 = vector.broadcast %cst_16 : f32 to vector<1x128xf32>
    %19 = arith.mulf %11, %18 : vector<1x128xf32>
    %20 = arith.subf %17, %19 : vector<1x128xf32>
    %cst_17 = arith.constant -1.000000e+00 : f32
    %21 = vector.broadcast %cst_17 : f32 to vector<1x128xf32>
    %22 = arith.mulf %9, %21 : vector<1x128xf32>
    %cst_18 = arith.constant -1.83697015E-16 : f32
    %23 = vector.broadcast %cst_18 : f32 to vector<1x128xf32>
    %24 = arith.mulf %11, %23 : vector<1x128xf32>
    %25 = arith.addf %22, %24 : vector<1x128xf32>
    %cst_19 = arith.constant 0.707106769 : f32
    %26 = vector.broadcast %cst_19 : f32 to vector<1x128xf32>
    %27 = arith.mulf %26, %1 : vector<1x128xf32>
    %cst_20 = arith.constant 0.707106769 : f32
    %28 = vector.broadcast %cst_20 : f32 to vector<1x128xf32>
    %29 = arith.mulf %28, %25 : vector<1x128xf32>
    %30 = arith.subf %27, %29 : vector<1x128xf32>
    %cst_21 = arith.constant 0.707106769 : f32
    %31 = vector.broadcast %cst_21 : f32 to vector<1x128xf32>
    %32 = arith.mulf %31, %3 : vector<1x128xf32>
    %cst_22 = arith.constant 0.707106769 : f32
    %33 = vector.broadcast %cst_22 : f32 to vector<1x128xf32>
    %34 = arith.mulf %33, %20 : vector<1x128xf32>
    %35 = arith.addf %32, %34 : vector<1x128xf32>
    %cst_23 = arith.constant 0.707106769 : f32
    %36 = vector.broadcast %cst_23 : f32 to vector<1x128xf32>
    %37 = arith.mulf %36, %20 : vector<1x128xf32>
    %cst_24 = arith.constant 0.707106769 : f32
    %38 = vector.broadcast %cst_24 : f32 to vector<1x128xf32>
    %39 = arith.mulf %38, %3 : vector<1x128xf32>
    %40 = arith.subf %37, %39 : vector<1x128xf32>
    %cst_25 = arith.constant 0.707106769 : f32
    %41 = vector.broadcast %cst_25 : f32 to vector<1x128xf32>
    %42 = arith.mulf %41, %25 : vector<1x128xf32>
    %cst_26 = arith.constant 0.707106769 : f32
    %43 = vector.broadcast %cst_26 : f32 to vector<1x128xf32>
    %44 = arith.mulf %43, %1 : vector<1x128xf32>
    %45 = arith.addf %42, %44 : vector<1x128xf32>
    %cst_27 = arith.constant -1.83697015E-16 : f32
    %46 = vector.broadcast %cst_27 : f32 to vector<1x128xf32>
    %47 = arith.mulf %40, %46 : vector<1x128xf32>
    %cst_28 = arith.constant -1.000000e+00 : f32
    %48 = vector.broadcast %cst_28 : f32 to vector<1x128xf32>
    %49 = arith.mulf %45, %48 : vector<1x128xf32>
    %50 = arith.subf %47, %49 : vector<1x128xf32>
    %cst_29 = arith.constant -1.000000e+00 : f32
    %51 = vector.broadcast %cst_29 : f32 to vector<1x128xf32>
    %52 = arith.mulf %40, %51 : vector<1x128xf32>
    %cst_30 = arith.constant -1.83697015E-16 : f32
    %53 = vector.broadcast %cst_30 : f32 to vector<1x128xf32>
    %54 = arith.mulf %45, %53 : vector<1x128xf32>
    %55 = arith.addf %52, %54 : vector<1x128xf32>
    %cst_31 = arith.constant -1.83697015E-16 : f32
    %56 = vector.broadcast %cst_31 : f32 to vector<1x128xf32>
    %57 = arith.mulf %13, %56 : vector<1x128xf32>
    %cst_32 = arith.constant -1.000000e+00 : f32
    %58 = vector.broadcast %cst_32 : f32 to vector<1x128xf32>
    %59 = arith.mulf %15, %58 : vector<1x128xf32>
    %60 = arith.subf %57, %59 : vector<1x128xf32>
    %cst_33 = arith.constant -1.000000e+00 : f32
    %61 = vector.broadcast %cst_33 : f32 to vector<1x128xf32>
    %62 = arith.mulf %13, %61 : vector<1x128xf32>
    %cst_34 = arith.constant -1.83697015E-16 : f32
    %63 = vector.broadcast %cst_34 : f32 to vector<1x128xf32>
    %64 = arith.mulf %15, %63 : vector<1x128xf32>
    %65 = arith.addf %62, %64 : vector<1x128xf32>
    %cst_35 = arith.constant 0.707106769 : f32
    %66 = vector.broadcast %cst_35 : f32 to vector<1x128xf32>
    %67 = arith.mulf %66, %5 : vector<1x128xf32>
    %cst_36 = arith.constant 0.707106769 : f32
    %68 = vector.broadcast %cst_36 : f32 to vector<1x128xf32>
    %69 = arith.mulf %68, %65 : vector<1x128xf32>
    %70 = arith.subf %67, %69 : vector<1x128xf32>
    %cst_37 = arith.constant 0.707106769 : f32
    %71 = vector.broadcast %cst_37 : f32 to vector<1x128xf32>
    %72 = arith.mulf %71, %7 : vector<1x128xf32>
    %cst_38 = arith.constant 0.707106769 : f32
    %73 = vector.broadcast %cst_38 : f32 to vector<1x128xf32>
    %74 = arith.mulf %73, %60 : vector<1x128xf32>
    %75 = arith.addf %72, %74 : vector<1x128xf32>
    %cst_39 = arith.constant 0.707106769 : f32
    %76 = vector.broadcast %cst_39 : f32 to vector<1x128xf32>
    %77 = arith.mulf %76, %60 : vector<1x128xf32>
    %cst_40 = arith.constant 0.707106769 : f32
    %78 = vector.broadcast %cst_40 : f32 to vector<1x128xf32>
    %79 = arith.mulf %78, %7 : vector<1x128xf32>
    %80 = arith.subf %77, %79 : vector<1x128xf32>
    %cst_41 = arith.constant 0.707106769 : f32
    %81 = vector.broadcast %cst_41 : f32 to vector<1x128xf32>
    %82 = arith.mulf %81, %65 : vector<1x128xf32>
    %cst_42 = arith.constant 0.707106769 : f32
    %83 = vector.broadcast %cst_42 : f32 to vector<1x128xf32>
    %84 = arith.mulf %83, %5 : vector<1x128xf32>
    %85 = arith.addf %82, %84 : vector<1x128xf32>
    %cst_43 = arith.constant -1.83697015E-16 : f32
    %86 = vector.broadcast %cst_43 : f32 to vector<1x128xf32>
    %87 = arith.mulf %80, %86 : vector<1x128xf32>
    %cst_44 = arith.constant -1.000000e+00 : f32
    %88 = vector.broadcast %cst_44 : f32 to vector<1x128xf32>
    %89 = arith.mulf %85, %88 : vector<1x128xf32>
    %90 = arith.subf %87, %89 : vector<1x128xf32>
    %cst_45 = arith.constant -1.000000e+00 : f32
    %91 = vector.broadcast %cst_45 : f32 to vector<1x128xf32>
    %92 = arith.mulf %80, %91 : vector<1x128xf32>
    %cst_46 = arith.constant -1.83697015E-16 : f32
    %93 = vector.broadcast %cst_46 : f32 to vector<1x128xf32>
    %94 = arith.mulf %85, %93 : vector<1x128xf32>
    %95 = arith.addf %92, %94 : vector<1x128xf32>
    %cst_47 = arith.constant -1.83697015E-16 : f32
    %96 = vector.broadcast %cst_47 : f32 to vector<1x128xf32>
    %97 = arith.mulf %70, %96 : vector<1x128xf32>
    %cst_48 = arith.constant -1.000000e+00 : f32
    %98 = vector.broadcast %cst_48 : f32 to vector<1x128xf32>
    %99 = arith.mulf %75, %98 : vector<1x128xf32>
    %100 = arith.subf %97, %99 : vector<1x128xf32>
    %cst_49 = arith.constant -1.000000e+00 : f32
    %101 = vector.broadcast %cst_49 : f32 to vector<1x128xf32>
    %102 = arith.mulf %70, %101 : vector<1x128xf32>
    %cst_50 = arith.constant -1.83697015E-16 : f32
    %103 = vector.broadcast %cst_50 : f32 to vector<1x128xf32>
    %104 = arith.mulf %75, %103 : vector<1x128xf32>
    %105 = arith.addf %102, %104 : vector<1x128xf32>
    %cst_51 = arith.constant 0.707106769 : f32
    %106 = vector.broadcast %cst_51 : f32 to vector<1x128xf32>
    %107 = arith.mulf %106, %30 : vector<1x128xf32>
    %cst_52 = arith.constant 0.707106769 : f32
    %108 = vector.broadcast %cst_52 : f32 to vector<1x128xf32>
    %109 = arith.mulf %108, %105 : vector<1x128xf32>
    %110 = arith.subf %107, %109 : vector<1x128xf32>
    %cst_53 = arith.constant 0.707106769 : f32
    %111 = vector.broadcast %cst_53 : f32 to vector<1x128xf32>
    %112 = arith.mulf %111, %35 : vector<1x128xf32>
    %cst_54 = arith.constant 0.707106769 : f32
    %113 = vector.broadcast %cst_54 : f32 to vector<1x128xf32>
    %114 = arith.mulf %113, %100 : vector<1x128xf32>
    %115 = arith.addf %112, %114 : vector<1x128xf32>
    %cst_55 = arith.constant 0.707106769 : f32
    %116 = vector.broadcast %cst_55 : f32 to vector<1x128xf32>
    %117 = arith.mulf %116, %100 : vector<1x128xf32>
    %cst_56 = arith.constant 0.707106769 : f32
    %118 = vector.broadcast %cst_56 : f32 to vector<1x128xf32>
    %119 = arith.mulf %118, %35 : vector<1x128xf32>
    %120 = arith.subf %117, %119 : vector<1x128xf32>
    %cst_57 = arith.constant 0.707106769 : f32
    %121 = vector.broadcast %cst_57 : f32 to vector<1x128xf32>
    %122 = arith.mulf %121, %105 : vector<1x128xf32>
    %cst_58 = arith.constant 0.707106769 : f32
    %123 = vector.broadcast %cst_58 : f32 to vector<1x128xf32>
    %124 = arith.mulf %123, %30 : vector<1x128xf32>
    %125 = arith.addf %122, %124 : vector<1x128xf32>
    %cst_59 = arith.constant -1.83697015E-16 : f32
    %126 = vector.broadcast %cst_59 : f32 to vector<1x128xf32>
    %127 = arith.mulf %120, %126 : vector<1x128xf32>
    %cst_60 = arith.constant -1.000000e+00 : f32
    %128 = vector.broadcast %cst_60 : f32 to vector<1x128xf32>
    %129 = arith.mulf %125, %128 : vector<1x128xf32>
    %130 = arith.subf %127, %129 : vector<1x128xf32>
    %cst_61 = arith.constant -1.000000e+00 : f32
    %131 = vector.broadcast %cst_61 : f32 to vector<1x128xf32>
    %132 = arith.mulf %120, %131 : vector<1x128xf32>
    %cst_62 = arith.constant -1.83697015E-16 : f32
    %133 = vector.broadcast %cst_62 : f32 to vector<1x128xf32>
    %134 = arith.mulf %125, %133 : vector<1x128xf32>
    %135 = arith.addf %132, %134 : vector<1x128xf32>
    %cst_63 = arith.constant 6.12323426E-17 : f32
    %136 = vector.broadcast %cst_63 : f32 to vector<1x128xf32>
    %137 = arith.mulf %90, %136 : vector<1x128xf32>
    %cst_64 = arith.constant 1.000000e+00 : f32
    %138 = vector.broadcast %cst_64 : f32 to vector<1x128xf32>
    %139 = arith.mulf %95, %138 : vector<1x128xf32>
    %140 = arith.subf %137, %139 : vector<1x128xf32>
    %cst_65 = arith.constant 1.000000e+00 : f32
    %141 = vector.broadcast %cst_65 : f32 to vector<1x128xf32>
    %142 = arith.mulf %90, %141 : vector<1x128xf32>
    %cst_66 = arith.constant 6.12323426E-17 : f32
    %143 = vector.broadcast %cst_66 : f32 to vector<1x128xf32>
    %144 = arith.mulf %95, %143 : vector<1x128xf32>
    %145 = arith.addf %142, %144 : vector<1x128xf32>
    %cst_67 = arith.constant -1.83697015E-16 : f32
    %146 = vector.broadcast %cst_67 : f32 to vector<1x128xf32>
    %147 = arith.mulf %140, %146 : vector<1x128xf32>
    %cst_68 = arith.constant -1.000000e+00 : f32
    %148 = vector.broadcast %cst_68 : f32 to vector<1x128xf32>
    %149 = arith.mulf %145, %148 : vector<1x128xf32>
    %150 = arith.subf %147, %149 : vector<1x128xf32>
    %cst_69 = arith.constant -1.000000e+00 : f32
    %151 = vector.broadcast %cst_69 : f32 to vector<1x128xf32>
    %152 = arith.mulf %140, %151 : vector<1x128xf32>
    %cst_70 = arith.constant -1.83697015E-16 : f32
    %153 = vector.broadcast %cst_70 : f32 to vector<1x128xf32>
    %154 = arith.mulf %145, %153 : vector<1x128xf32>
    %155 = arith.addf %152, %154 : vector<1x128xf32>
    %cst_71 = arith.constant 0.707106769 : f32
    %156 = vector.broadcast %cst_71 : f32 to vector<1x128xf32>
    %157 = arith.mulf %156, %50 : vector<1x128xf32>
    %cst_72 = arith.constant 0.707106769 : f32
    %158 = vector.broadcast %cst_72 : f32 to vector<1x128xf32>
    %159 = arith.mulf %158, %155 : vector<1x128xf32>
    %160 = arith.subf %157, %159 : vector<1x128xf32>
    %cst_73 = arith.constant 0.707106769 : f32
    %161 = vector.broadcast %cst_73 : f32 to vector<1x128xf32>
    %162 = arith.mulf %161, %55 : vector<1x128xf32>
    %cst_74 = arith.constant 0.707106769 : f32
    %163 = vector.broadcast %cst_74 : f32 to vector<1x128xf32>
    %164 = arith.mulf %163, %150 : vector<1x128xf32>
    %165 = arith.addf %162, %164 : vector<1x128xf32>
    %cst_75 = arith.constant 0.707106769 : f32
    %166 = vector.broadcast %cst_75 : f32 to vector<1x128xf32>
    %167 = arith.mulf %166, %150 : vector<1x128xf32>
    %cst_76 = arith.constant 0.707106769 : f32
    %168 = vector.broadcast %cst_76 : f32 to vector<1x128xf32>
    %169 = arith.mulf %168, %55 : vector<1x128xf32>
    %170 = arith.subf %167, %169 : vector<1x128xf32>
    %cst_77 = arith.constant 0.707106769 : f32
    %171 = vector.broadcast %cst_77 : f32 to vector<1x128xf32>
    %172 = arith.mulf %171, %155 : vector<1x128xf32>
    %cst_78 = arith.constant 0.707106769 : f32
    %173 = vector.broadcast %cst_78 : f32 to vector<1x128xf32>
    %174 = arith.mulf %173, %50 : vector<1x128xf32>
    %175 = arith.addf %172, %174 : vector<1x128xf32>
    %cst_79 = arith.constant -1.83697015E-16 : f32
    %176 = vector.broadcast %cst_79 : f32 to vector<1x128xf32>
    %177 = arith.mulf %170, %176 : vector<1x128xf32>
    %cst_80 = arith.constant -1.000000e+00 : f32
    %178 = vector.broadcast %cst_80 : f32 to vector<1x128xf32>
    %179 = arith.mulf %175, %178 : vector<1x128xf32>
    %180 = arith.subf %177, %179 : vector<1x128xf32>
    %cst_81 = arith.constant -1.000000e+00 : f32
    %181 = vector.broadcast %cst_81 : f32 to vector<1x128xf32>
    %182 = arith.mulf %170, %181 : vector<1x128xf32>
    %cst_82 = arith.constant -1.83697015E-16 : f32
    %183 = vector.broadcast %cst_82 : f32 to vector<1x128xf32>
    %184 = arith.mulf %175, %183 : vector<1x128xf32>
    %185 = arith.addf %182, %184 : vector<1x128xf32>
    %c0_83 = arith.constant 0 : index
    %c0_84 = arith.constant 0 : index
    %c0_85 = arith.constant 0 : index
    %186 = vector.load %arg2[%c0_83, %c0_84, %c0_85] : memref<8x1x128xf32, #tpu.memory_space<vmem>>, vector<1x1x128xf32>
    %187 = vector.shape_cast %186 : vector<1x1x128xf32> to vector<1x128xf32>
    %188 = vector.shape_cast %110 : vector<1x128xf32> to vector<1x1x128xf32>
    tpu.vector_store %arg2[%c0_83, %c0_84, %c0_85], %188 {strides = array<i32>} : memref<8x1x128xf32, #tpu.memory_space<vmem>>, vector<1x1x128xf32>,
    %c1_86 = arith.constant 1 : index
    %c0_87 = arith.constant 0 : index
    %c0_88 = arith.constant 0 : index
    %189 = vector.load %arg2[%c1_86, %c0_87, %c0_88] : memref<8x1x128xf32, #tpu.memory_space<vmem>>, vector<1x1x128xf32>
    %190 = vector.shape_cast %189 : vector<1x1x128xf32> to vector<1x128xf32>
    %191 = vector.shape_cast %115 : vector<1x128xf32> to vector<1x1x128xf32>
    tpu.vector_store %arg2[%c1_86, %c0_87, %c0_88], %191 {strides = array<i32>} : memref<8x1x128xf32, #tpu.memory_space<vmem>>, vector<1x1x128xf32>,
    %c2_89 = arith.constant 2 : index
    %c0_90 = arith.constant 0 : index
    %c0_91 = arith.constant 0 : index
    %192 = vector.load %arg2[%c2_89, %c0_90, %c0_91] : memref<8x1x128xf32, #tpu.memory_space<vmem>>, vector<1x1x128xf32>
    %193 = vector.shape_cast %192 : vector<1x1x128xf32> to vector<1x128xf32>
    %194 = vector.shape_cast %160 : vector<1x128xf32> to vector<1x1x128xf32>
    tpu.vector_store %arg2[%c2_89, %c0_90, %c0_91], %194 {strides = array<i32>} : memref<8x1x128xf32, #tpu.memory_space<vmem>>, vector<1x1x128xf32>,
    %c3_92 = arith.constant 3 : index
    %c0_93 = arith.constant 0 : index
    %c0_94 = arith.constant 0 : index
    %195 = vector.load %arg2[%c3_92, %c0_93, %c0_94] : memref<8x1x128xf32, #tpu.memory_space<vmem>>, vector<1x1x128xf32>
    %196 = vector.shape_cast %195 : vector<1x1x128xf32> to vector<1x128xf32>
    %197 = vector.shape_cast %165 : vector<1x128xf32> to vector<1x1x128xf32>
    tpu.vector_store %arg2[%c3_92, %c0_93, %c0_94], %197 {strides = array<i32>} : memref<8x1x128xf32, #tpu.memory_space<vmem>>, vector<1x1x128xf32>,
    %c4_95 = arith.constant 4 : index
    %c0_96 = arith.constant 0 : index
    %c0_97 = arith.constant 0 : index
    %198 = vector.load %arg2[%c4_95, %c0_96, %c0_97] : memref<8x1x128xf32, #tpu.memory_space<vmem>>, vector<1x1x128xf32>
    %199 = vector.shape_cast %198 : vector<1x1x128xf32> to vector<1x128xf32>
    %200 = vector.shape_cast %130 : vector<1x128xf32> to vector<1x1x128xf32>
    tpu.vector_store %arg2[%c4_95, %c0_96, %c0_97], %200 {strides = array<i32>} : memref<8x1x128xf32, #tpu.memory_space<vmem>>, vector<1x1x128xf32>,
    %c5_98 = arith.constant 5 : index
    %c0_99 = arith.constant 0 : index
    %c0_100 = arith.constant 0 : index
    %201 = vector.load %arg2[%c5_98, %c0_99, %c0_100] : memref<8x1x128xf32, #tpu.memory_space<vmem>>, vector<1x1x128xf32>
    %202 = vector.shape_cast %201 : vector<1x1x128xf32> to vector<1x128xf32>
    %203 = vector.shape_cast %135 : vector<1x128xf32> to vector<1x1x128xf32>
    tpu.vector_store %arg2[%c5_98, %c0_99, %c0_100], %203 {strides = array<i32>} : memref<8x1x128xf32, #tpu.memory_space<vmem>>, vector<1x1x128xf32>,
    %c6_101 = arith.constant 6 : index
    %c0_102 = arith.constant 0 : index
    %c0_103 = arith.constant 0 : index
    %204 = vector.load %arg2[%c6_101, %c0_102, %c0_103] : memref<8x1x128xf32, #tpu.memory_space<vmem>>, vector<1x1x128xf32>
    %205 = vector.shape_cast %204 : vector<1x1x128xf32> to vector<1x128xf32>
    %206 = vector.shape_cast %180 : vector<1x128xf32> to vector<1x1x128xf32>
    tpu.vector_store %arg2[%c6_101, %c0_102, %c0_103], %206 {strides = array<i32>} : memref<8x1x128xf32, #tpu.memory_space<vmem>>, vector<1x1x128xf32>,
    %c7_104 = arith.constant 7 : index
    %c0_105 = arith.constant 0 : index
    %c0_106 = arith.constant 0 : index
    %207 = vector.load %arg2[%c7_104, %c0_105, %c0_106] : memref<8x1x128xf32, #tpu.memory_space<vmem>>, vector<1x1x128xf32>
    %208 = vector.shape_cast %207 : vector<1x1x128xf32> to vector<1x128xf32>
    %209 = vector.shape_cast %185 : vector<1x128xf32> to vector<1x1x128xf32>
    tpu.vector_store %arg2[%c7_104, %c0_105, %c0_106], %209 {strides = array<i32>} : memref<8x1x128xf32, #tpu.memory_space<vmem>>, vector<1x1x128xf32>,
    return
  }
  func.func @transform_0(%arg0: i32) -> (i32, i32, i32) {
    %c0_i32 = arith.constant 0 : i32
    %c0_i32_0 = arith.constant 0 : i32
    %c0_i32_1 = arith.constant 0 : i32
    return %c0_i32, %arg0, %c0_i32_0 : i32, i32, i32
  }
  func.func @transform_1(%arg0: i32) -> (i32, i32, i32) {
    %c0_i32 = arith.constant 0 : i32
    %c0_i32_0 = arith.constant 0 : i32
    %c0_i32_1 = arith.constant 0 : i32
    return %c0_i32, %arg0, %c0_i32_0 : i32, i32, i32
  }
}

</mosaic_0001>

<bundles_post_ra>
// kernel: oifft4.1
= control target key start
LH: loop header
LB: loop body
LE: loop exit
PB: predicated region body
PF: predicated region fallthrough
CT: control target
= control target key end

     0   :  { %s198_s0 = inlined_call_operand.vmem [shape: f32[8,1,128], index: 0, kind: input, shape index: {}, may-alias: {0,1}]   ;;  %s199_s1 = inlined_call_operand.vmem [shape: f32[8,1,128], index: 1, kind: output, shape index: {}, may-alias: {0,1}]  }
   0x1   :  { %v128_v0 = vld [vmem:[%s198_s0 + $0x3] sm:$0x1]  ;;  %v8_v1 = vld [vmem:[%s198_s0] sm:$0x1]  ;;  %v129_v2 = vld [vmem:[%s198_s0 + $0x4] sm:$0x1] }
   0x2   :  { %v130_v3 = vld [vmem:[%s198_s0 + $0x5] sm:$0x1]  ;;  %v131_v4 = vld [vmem:[%s198_s0 + $0x6] sm:$0x1]  ;;  %v132_v5 = vld [vmem:[%s198_s0 + $0x7] sm:$0x1] }
   0x3   :  { %v26_v6 = vmul.f32 -1.0, %v129_v2  ;;  %v27_v7 = vmul.f32 -1.8369701e-16, %v130_v3  ;;  %v46_v8 = vmul.f32 -1.0, %v131_v4  ;;  %v127_v9 = vld [vmem:[%s198_s0 + $0x2] sm:$0x1] }
   0x4   :  { %v43_v10 = vmul.f32 -1.8369701e-16, %v131_v4  ;;  %v44_v11 = vmul.f32 -1.0, %v132_v5  ;;  %v24_v12 = vmul.f32 -1.0, %v130_v3  ;;  %v47_v14 = vmul.f32 -1.8369701e-16, %v132_v5 }
   0x5   :  { %v28_v13 = vadd.f32 %v27_v7, %v26_v6  ;;  %v52_v16 = vmul.f32 0.70710677, %v128_v0  ;;  %v126_v17 = vld [vmem:[%s198_s0 + $0x1] sm:$0x1]  ;;  %v23_v18 = vmul.f32 -1.8369701e-16, %v129_v2 }
   0x6   :  { %v45_v15 = vsub.f32 %v43_v10, %v44_v11  ;;  %v29_v19 = vmul.f32 0.70710677, %v8_v1  ;;  %v48_v20 = vadd.f32 %v47_v14, %v46_v8  ;;  %v49_v21 = vmul.f32 0.70710677, %v127_v9 }
   0x7   :  { %v30_v22 = vmul.f32 0.70710677, %v28_v13  ;;  %v25_v24 = vsub.f32 %v23_v18, %v24_v12  ;;  %v32_v25 = vmul.f32 0.70710677, %v126_v17 }
   0x8   :  { %v53_v23 = vmul.f32 0.70710677, %v45_v15  ;;  %v50_v26 = vmul.f32 0.70710677, %v48_v20 }
   0x9   :  { %v31_v27 = vsub.f32 %v29_v19, %v30_v22  ;;  %v33_v30 = vmul.f32 0.70710677, %v25_v24  ;;  %v36_v33 = vadd.f32 %v30_v22, %v29_v19 }
   0xa   :  { %v54_v28 = vadd.f32 %v53_v23, %v52_v16  ;;  %v55_v29 = vsub.f32 %v53_v23, %v52_v16  ;;  %v51_v31 = vsub.f32 %v49_v21, %v50_v26  ;;  %v56_v32 = vadd.f32 %v50_v26, %v49_v21 }
   0xb   :  { %v34_v35 = vadd.f32 %v33_v30, %v32_v25  ;;  %v35_v36 = vsub.f32 %v33_v30, %v32_v25  ;;  %v69_v41 = vmul.f32 0.70710677, %v31_v27  ;;  %v38_v48 = vmul.f32 -1.0, %v36_v33 }
   0xc   :  { %v67_v34 = vmul.f32 -1.8369701e-16, %v54_v28  ;;  %v66_v37 = vmul.f32 -1.0, %v51_v31  ;;  %v63_v38 = vmul.f32 -1.8369701e-16, %v51_v31  ;;  %v64_v39 = vmul.f32 -1.0, %v54_v28 }
   0xd   :  { %v57_v40 = vmul.f32 -1.8369701e-16, %v55_v29  ;;  %v72_v42 = vmul.f32 0.70710677, %v34_v35  ;;  %v58_v43 = vmul.f32 -1.0, %v56_v32  ;;  %v60_v46 = vmul.f32 -1.0, %v55_v29 }
   0xe   :  { %v68_v44 = vadd.f32 %v67_v34, %v66_v37  ;;  %v65_v45 = vsub.f32 %v63_v38, %v64_v39  ;;  %v61_v47 = vmul.f32 -1.8369701e-16, %v56_v32  ;;  %v37_v51 = vmul.f32 -1.8369701e-16, %v35_v36 }
   0xf   :  { %v59_v49 = vsub.f32 %v57_v40, %v58_v43  ;;  %v41_v54 = vmul.f32 -1.8369701e-16, %v36_v33  ;;  %v40_v55 = vmul.f32 -1.0, %v35_v36 }
  0x10   :  { %v70_v50 = vmul.f32 0.70710677, %v68_v44  ;;  %v73_v52 = vmul.f32 0.70710677, %v65_v45  ;;  %v62_v53 = vadd.f32 %v61_v47, %v60_v46  ;;  %v39_v63 = vsub.f32 %v37_v51, %v38_v48 }
  0x11   :  { %v83_v56 = vmul.f32 6.123234e-17, %v59_v49  ;;  %v42_v5 = vadd.f32 %v41_v54, %v40_v55 }
  0x12   :  { %v71_v57 = vsub.f32 %v69_v41, %v70_v50  ;;  %v76_v58 = vadd.f32 %v70_v50, %v69_v41  ;;  %v74_v59 = vadd.f32 %v73_v52, %v72_v42  ;;  %v75_v60 = vsub.f32 %v73_v52, %v72_v42 }
  0x13   :  { %v84_v61 = vsub.f32 %v83_v56, %v62_v53  ;;  %v85_v62 = vmul.f32 6.123234e-17, %v62_v53  ;;  %v93_v13 = vmul.f32 0.70710677, %v39_v63  ;;  %v96_v15 = vmul.f32 0.70710677, %v42_v5 }
  0x14   :  { %107 = vst [vmem:[%s199_s1] sm:$0x1] %v71_v57  ;;  %v77_v0 = vmul.f32 -1.8369701e-16, %v75_v60  ;;  %v78_v1 = vmul.f32 -1.0, %v76_v58  ;;  %v80_v2 = vmul.f32 -1.0, %v75_v60 }
  0x15   :  { %133 = vst [vmem:[%s199_s1 + $0x1] sm:$0x1] %v74_v59  ;;  %v86_v3 = vadd.f32 %v85_v62, %v59_v49  ;;  %v90_v4 = vmul.f32 -1.0, %v84_v61  ;;  %v87_v6 = vmul.f32 -1.8369701e-16, %v84_v61 }
  0x16   :  { %v79_v7 = vsub.f32 %v77_v0, %v78_v1  ;;  %v81_v8 = vmul.f32 -1.8369701e-16, %v76_v58 }
  0x17   :  { %v91_v9 = vmul.f32 -1.8369701e-16, %v86_v3  ;;  %v88_v10 = vmul.f32 -1.0, %v86_v3 }
  0x18   :  { %136 = vst [vmem:[%s199_s1 + $0x4] sm:$0x1] %v79_v7  ;;  %v82_v11 = vadd.f32 %v81_v8, %v80_v2 }
  0x19   :  { %v92_v12 = vadd.f32 %v91_v9, %v90_v4  ;;  %v89_v14 = vsub.f32 %v87_v6, %v88_v10 }
  0x1a   :  { %137 = vst [vmem:[%s199_s1 + $0x5] sm:$0x1] %v82_v11 }
  0x1b   :  { %v94_v16 = vmul.f32 0.70710677, %v92_v12  ;;  %v97_v17 = vmul.f32 0.70710677, %v89_v14 }
  0x1d   :  { %v95_v18 = vsub.f32 %v93_v13, %v94_v16  ;;  %v98_v19 = vadd.f32 %v97_v17, %v96_v15  ;;  %v99_v20 = vsub.f32 %v97_v17, %v96_v15  ;;  %v100_v21 = vadd.f32 %v94_v16, %v93_v13 }
  0x1f   :  { %134 = vst [vmem:[%s199_s1 + $0x2] sm:$0x1] %v95_v18  ;;  %v101_v22 = vmul.f32 -1.8369701e-16, %v99_v20  ;;  %v102_v23 = vmul.f32 -1.0, %v100_v21  ;;  %v104_v24 = vmul.f32 -1.0, %v99_v20 }
  0x20   :  { %135 = vst [vmem:[%s199_s1 + $0x3] sm:$0x1] %v98_v19  ;;  %v105_v25 = vmul.f32 -1.8369701e-16, %v100_v21 }
  0x21   :  { %v103_v26 = vsub.f32 %v101_v22, %v102_v23 }
  0x22   :  { %v106_v27 = vadd.f32 %v105_v25, %v104_v24 }
  0x23   :  { %138 = vst [vmem:[%s199_s1 + $0x6] sm:$0x1] %v103_v26 }
  0x24   :  { %139 = vst [vmem:[%s199_s1 + $0x7] sm:$0x1] %v106_v27 }

</bundles_post_ra>
